<compile_context>
chip_gen: v7x
topology: tpu7x:2x2x1
jax: 0.10.0
libtpu: 0.0.40
codegen_flags: <defaults>
</compile_context>

<pallas_src>
import jax
import jax.numpy as jnp
from jax.experimental import pallas as pl
from jax.experimental.pallas import tpu as pltpu


def _round_up(n, m):
    return ((n + m - 1) // m) * m


def mlp_kernel(x_ref, w1_ref, b1_ref, w2_ref, b2_ref, o_ref):
    # x_ref: (4, TB) f32 in VMEM (batch on lanes).
    # w1_ref (4,3), b1_ref (3,), w2_ref (3,2), b2_ref (2,) are SMEM scalars.
    x = x_ref[...]

    # fc1 + ReLU, fully unrolled as scalar-broadcast FMAs on the VPU:
    #   h[j, :] = relu(b1[j] + sum_k w1[k, j] * x[k, :])
    h = []
    for j in range(3):
        acc = b1_ref[j] + w1_ref[0, j] * x[0:1, :]
        for k in range(1, 4):
            acc = acc + w1_ref[k, j] * x[k:k + 1, :]
        h.append(jnp.maximum(acc, 0.0))

    # fc2:  out[j, :] = b2[j] + sum_k w2[k, j] * h[k]
    for j in range(2):
        out = b2_ref[j] + w2_ref[0, j] * h[0]
        for k in range(1, 3):
            out = out + w2_ref[k, j] * h[k]
        o_ref[j:j + 1, :] = out.astype(o_ref.dtype)


def simple_model_forward(x, w1, b1, w2, b2, *, tb=1024):
    """x: (B, 4) f32 -> (B, 2) f32 via the Pallas kernel.

    Weights stored as (in_features, out_features); biases are 1D.
    """
    B = x.shape[0]
    # Batch tile: multiple of 128 (lane width), capped at `tb`.
    tb_eff = min(_round_up(tb, 128), _round_up(B, 128))
    B_pad = _round_up(B, tb_eff)

    # Lane-dense transposed layout; pad batch so the grid tiles evenly.
    xt = x.T  # (4, B)
    if B_pad != B:
        xt = jnp.pad(xt, ((0, 0), (0, B_pad - B)))

    grid = (B_pad // tb_eff,)

    out_t = pl.pallas_call(
        mlp_kernel,
        out_shape=jax.ShapeDtypeStruct((2, B_pad), jnp.float32),
        grid=grid,
        in_specs=[
            pl.BlockSpec((4, tb_eff), lambda i: (0, i)),
            pl.BlockSpec(memory_space=pltpu.MemorySpace.SMEM),  # w1 (4,3)
            pl.BlockSpec(memory_space=pltpu.MemorySpace.SMEM),  # b1 (3,)
            pl.BlockSpec(memory_space=pltpu.MemorySpace.SMEM),  # w2 (3,2)
            pl.BlockSpec(memory_space=pltpu.MemorySpace.SMEM),  # b2 (2,)
        ],
        out_specs=pl.BlockSpec((2, tb_eff), lambda i: (0, i)),
        compiler_params=pltpu.CompilerParams(
            dimension_semantics=("parallel",),
        ),
    )(xt, w1, b1, w2, b2)

    return out_t[:, :B].T  # (B, 2)


def simple_model_forward_auto(x, w1, b1, w2, b2, *, small_batch=4096):
    """Dispatch tiny batches to plain XLA; large batches to the Pallas kernel."""
    if x.shape[0] < small_batch:
        return jnp.maximum(x @ w1 + b1, 0.0) @ w2 + b2
    return simple_model_forward(x, w1, b1, w2, b2)


def init_params(key):
    """Deterministic init mimicking nn.Linear's uniform(-1/sqrt(fan_in), ...)."""
    k1, k2, k3, k4 = jax.random.split(key, 4)
    bound1 = 1.0 / jnp.sqrt(4.0)
    bound2 = 1.0 / jnp.sqrt(3.0)
    # stored as (in_features, out_features); PyTorch stores (out, in)
    w1 = jax.random.uniform(k1, (4, 3), jnp.float32, -bound1, bound1)
    b1 = jax.random.uniform(k2, (3,), jnp.float32, -bound1, bound1)
    w2 = jax.random.uniform(k3, (3, 2), jnp.float32, -bound2, bound2)
    b2 = jax.random.uniform(k4, (2,), jnp.float32, -bound2, bound2)
    return w1, b1, w2, b2


def _ref(x, w1, b1, w2, b2):
    return jnp.maximum(x @ w1 + b1, 0.0) @ w2 + b2


if __name__ == "__main__":
    key = jax.random.PRNGKey(0)
    kx, kx2, kp = jax.random.split(key, 3)
    w1, b1, w2, b2 = init_params(kp)

    # Small batch (exercises padding / single-tile path).
    batch = 8
    x = jax.random.normal(kx, (batch, 4), jnp.float32)
    out = jax.block_until_ready(simple_model_forward(x, w1, b1, w2, b2))
    assert out.shape == (batch, 2)
    assert jnp.allclose(out, _ref(x, w1, b1, w2, b2), atol=1e-5), "mismatch (B=8)"

    # Larger batch (exercises the multi-step pipelined grid).
    batch2 = 2048
    x2 = jax.random.normal(kx2, (batch2, 4), jnp.float32)
    out2 = jax.block_until_ready(simple_model_forward(x2, w1, b1, w2, b2))
    assert out2.shape == (batch2, 2)
    assert jnp.allclose(out2, _ref(x2, w1, b1, w2, b2), atol=1e-5), "mismatch (B=2048)"

    print("KERNEL_OK")
</pallas_src>

<mosaic_0001>
module attributes {stable_mosaic.version = 11 : i64} {
  func.func @mlp_kernel(%arg0: i32, %arg1: memref<4x128xf32, #tpu.memory_space<vmem>>, %arg2: memref<4x3xf32, #tpu.memory_space<smem>>, %arg3: memref<3xf32, #tpu.memory_space<smem>>, %arg4: memref<3x2xf32, #tpu.memory_space<smem>>, %arg5: memref<2xf32, #tpu.memory_space<smem>>, %arg6: memref<2x128xf32, #tpu.memory_space<vmem>>) attributes {dimension_semantics = [#tpu.dimension_semantics<parallel>], iteration_bounds = array<i64: 1>, scalar_prefetch = 0 : i64, scratch_operands = 0 : i64, tpu.core_type = #tpu.core_type<tc>, window_params = [{transform_indices = @transform_0, window_bounds = array<i64: 4, 128>}, {transform_indices = @transform_1, window_bounds = array<i64: 4, 3>}, {transform_indices = @transform_2, window_bounds = array<i64: 3>}, {transform_indices = @transform_3, window_bounds = array<i64: 3, 2>}, {transform_indices = @transform_4, window_bounds = array<i64: 2>}, {transform_indices = @transform_5, window_bounds = array<i64: 2, 128>}]} {
    %c0 = arith.constant 0 : index
    %c0_0 = arith.constant 0 : index
    %0 = vector.load %arg1[%c0, %c0_0] : memref<4x128xf32, #tpu.memory_space<vmem>>, vector<4x128xf32>
    %c0_1 = arith.constant 0 : index
    %1 = memref.load %arg3[%c0_1] : memref<3xf32, #tpu.memory_space<smem>>
    %c0_2 = arith.constant 0 : index
    %c0_3 = arith.constant 0 : index
    %2 = memref.load %arg2[%c0_2, %c0_3] : memref<4x3xf32, #tpu.memory_space<smem>>
    %3 = vector.extract_strided_slice %0 {offsets = [0, 0], sizes = [1, 128], strides = [1, 1]} : vector<4x128xf32> to vector<1x128xf32>
    %4 = vector.broadcast %2 : f32 to vector<1x128xf32>
    %5 = arith.mulf %4, %3 : vector<1x128xf32>
    %6 = vector.broadcast %1 : f32 to vector<1x128xf32>
    %7 = arith.addf %6, %5 : vector<1x128xf32>
    %c1 = arith.constant 1 : index
    %c0_4 = arith.constant 0 : index
    %8 = memref.load %arg2[%c1, %c0_4] : memref<4x3xf32, #tpu.memory_space<smem>>
    %9 = vector.extract_strided_slice %0 {offsets = [1, 0], sizes = [1, 128], strides = [1, 1]} : vector<4x128xf32> to vector<1x128xf32>
    %10 = vector.broadcast %8 : f32 to vector<1x128xf32>
    %11 = arith.mulf %10, %9 : vector<1x128xf32>
    %12 = arith.addf %7, %11 : vector<1x128xf32>
    %c2 = arith.constant 2 : index
    %c0_5 = arith.constant 0 : index
    %13 = memref.load %arg2[%c2, %c0_5] : memref<4x3xf32, #tpu.memory_space<smem>>
    %14 = vector.extract_strided_slice %0 {offsets = [2, 0], sizes = [1, 128], strides = [1, 1]} : vector<4x128xf32> to vector<1x128xf32>
    %15 = vector.broadcast %13 : f32 to vector<1x128xf32>
    %16 = arith.mulf %15, %14 : vector<1x128xf32>
    %17 = arith.addf %12, %16 : vector<1x128xf32>
    %c3 = arith.constant 3 : index
    %c0_6 = arith.constant 0 : index
    %18 = memref.load %arg2[%c3, %c0_6] : memref<4x3xf32, #tpu.memory_space<smem>>
    %19 = vector.extract_strided_slice %0 {offsets = [3, 0], sizes = [1, 128], strides = [1, 1]} : vector<4x128xf32> to vector<1x128xf32>
    %20 = vector.broadcast %18 : f32 to vector<1x128xf32>
    %21 = arith.mulf %20, %19 : vector<1x128xf32>
    %22 = arith.addf %17, %21 : vector<1x128xf32>
    %cst = arith.constant 0.000000e+00 : f32
    %23 = vector.broadcast %cst : f32 to vector<1x128xf32>
    %24 = arith.maximumf %22, %23 : vector<1x128xf32>
    %c1_7 = arith.constant 1 : index
    %25 = memref.load %arg3[%c1_7] : memref<3xf32, #tpu.memory_space<smem>>
    %c0_8 = arith.constant 0 : index
    %c1_9 = arith.constant 1 : index
    %26 = memref.load %arg2[%c0_8, %c1_9] : memref<4x3xf32, #tpu.memory_space<smem>>
    %27 = vector.extract_strided_slice %0 {offsets = [0, 0], sizes = [1, 128], strides = [1, 1]} : vector<4x128xf32> to vector<1x128xf32>
    %28 = vector.broadcast %26 : f32 to vector<1x128xf32>
    %29 = arith.mulf %28, %27 : vector<1x128xf32>
    %30 = vector.broadcast %25 : f32 to vector<1x128xf32>
    %31 = arith.addf %30, %29 : vector<1x128xf32>
    %c1_10 = arith.constant 1 : index
    %c1_11 = arith.constant 1 : index
    %32 = memref.load %arg2[%c1_10, %c1_11] : memref<4x3xf32, #tpu.memory_space<smem>>
    %33 = vector.extract_strided_slice %0 {offsets = [1, 0], sizes = [1, 128], strides = [1, 1]} : vector<4x128xf32> to vector<1x128xf32>
    %34 = vector.broadcast %32 : f32 to vector<1x128xf32>
    %35 = arith.mulf %34, %33 : vector<1x128xf32>
    %36 = arith.addf %31, %35 : vector<1x128xf32>
    %c2_12 = arith.constant 2 : index
    %c1_13 = arith.constant 1 : index
    %37 = memref.load %arg2[%c2_12, %c1_13] : memref<4x3xf32, #tpu.memory_space<smem>>
    %38 = vector.extract_strided_slice %0 {offsets = [2, 0], sizes = [1, 128], strides = [1, 1]} : vector<4x128xf32> to vector<1x128xf32>
    %39 = vector.broadcast %37 : f32 to vector<1x128xf32>
    %40 = arith.mulf %39, %38 : vector<1x128xf32>
    %41 = arith.addf %36, %40 : vector<1x128xf32>
    %c3_14 = arith.constant 3 : index
    %c1_15 = arith.constant 1 : index
    %42 = memref.load %arg2[%c3_14, %c1_15] : memref<4x3xf32, #tpu.memory_space<smem>>
    %43 = vector.extract_strided_slice %0 {offsets = [3, 0], sizes = [1, 128], strides = [1, 1]} : vector<4x128xf32> to vector<1x128xf32>
    %44 = vector.broadcast %42 : f32 to vector<1x128xf32>
    %45 = arith.mulf %44, %43 : vector<1x128xf32>
    %46 = arith.addf %41, %45 : vector<1x128xf32>
    %cst_16 = arith.constant 0.000000e+00 : f32
    %47 = vector.broadcast %cst_16 : f32 to vector<1x128xf32>
    %48 = arith.maximumf %46, %47 : vector<1x128xf32>
    %c2_17 = arith.constant 2 : index
    %49 = memref.load %arg3[%c2_17] : memref<3xf32, #tpu.memory_space<smem>>
    %c0_18 = arith.constant 0 : index
    %c2_19 = arith.constant 2 : index
    %50 = memref.load %arg2[%c0_18, %c2_19] : memref<4x3xf32, #tpu.memory_space<smem>>
    %51 = vector.extract_strided_slice %0 {offsets = [0, 0], sizes = [1, 128], strides = [1, 1]} : vector<4x128xf32> to vector<1x128xf32>
    %52 = vector.broadcast %50 : f32 to vector<1x128xf32>
    %53 = arith.mulf %52, %51 : vector<1x128xf32>
    %54 = vector.broadcast %49 : f32 to vector<1x128xf32>
    %55 = arith.addf %54, %53 : vector<1x128xf32>
    %c1_20 = arith.constant 1 : index
    %c2_21 = arith.constant 2 : index
    %56 = memref.load %arg2[%c1_20, %c2_21] : memref<4x3xf32, #tpu.memory_space<smem>>
    %57 = vector.extract_strided_slice %0 {offsets = [1, 0], sizes = [1, 128], strides = [1, 1]} : vector<4x128xf32> to vector<1x128xf32>
    %58 = vector.broadcast %56 : f32 to vector<1x128xf32>
    %59 = arith.mulf %58, %57 : vector<1x128xf32>
    %60 = arith.addf %55, %59 : vector<1x128xf32>
    %c2_22 = arith.constant 2 : index
    %c2_23 = arith.constant 2 : index
    %61 = memref.load %arg2[%c2_22, %c2_23] : memref<4x3xf32, #tpu.memory_space<smem>>
    %62 = vector.extract_strided_slice %0 {offsets = [2, 0], sizes = [1, 128], strides = [1, 1]} : vector<4x128xf32> to vector<1x128xf32>
    %63 = vector.broadcast %61 : f32 to vector<1x128xf32>
    %64 = arith.mulf %63, %62 : vector<1x128xf32>
    %65 = arith.addf %60, %64 : vector<1x128xf32>
    %c3_24 = arith.constant 3 : index
    %c2_25 = arith.constant 2 : index
    %66 = memref.load %arg2[%c3_24, %c2_25] : memref<4x3xf32, #tpu.memory_space<smem>>
    %67 = vector.extract_strided_slice %0 {offsets = [3, 0], sizes = [1, 128], strides = [1, 1]} : vector<4x128xf32> to vector<1x128xf32>
    %68 = vector.broadcast %66 : f32 to vector<1x128xf32>
    %69 = arith.mulf %68, %67 : vector<1x128xf32>
    %70 = arith.addf %65, %69 : vector<1x128xf32>
    %cst_26 = arith.constant 0.000000e+00 : f32
    %71 = vector.broadcast %cst_26 : f32 to vector<1x128xf32>
    %72 = arith.maximumf %70, %71 : vector<1x128xf32>
    %c0_27 = arith.constant 0 : index
    %73 = memref.load %arg5[%c0_27] : memref<2xf32, #tpu.memory_space<smem>>
    %c0_28 = arith.constant 0 : index
    %c0_29 = arith.constant 0 : index
    %74 = memref.load %arg4[%c0_28, %c0_29] : memref<3x2xf32, #tpu.memory_space<smem>>
    %75 = vector.broadcast %74 : f32 to vector<1x128xf32>
    %76 = arith.mulf %75, %24 : vector<1x128xf32>
    %77 = vector.broadcast %73 : f32 to vector<1x128xf32>
    %78 = arith.addf %77, %76 : vector<1x128xf32>
    %c1_30 = arith.constant 1 : index
    %c0_31 = arith.constant 0 : index
    %79 = memref.load %arg4[%c1_30, %c0_31] : memref<3x2xf32, #tpu.memory_space<smem>>
    %80 = vector.broadcast %79 : f32 to vector<1x128xf32>
    %81 = arith.mulf %80, %48 : vector<1x128xf32>
    %82 = arith.addf %78, %81 : vector<1x128xf32>
    %c2_32 = arith.constant 2 : index
    %c0_33 = arith.constant 0 : index
    %83 = memref.load %arg4[%c2_32, %c0_33] : memref<3x2xf32, #tpu.memory_space<smem>>
    %84 = vector.broadcast %83 : f32 to vector<1x128xf32>
    %85 = arith.mulf %84, %72 : vector<1x128xf32>
    %86 = arith.addf %82, %85 : vector<1x128xf32>
    %c0_34 = arith.constant 0 : index
    %c0_35 = arith.constant 0 : index
    %87 = vector.load %arg6[%c0_34, %c0_35] : memref<2x128xf32, #tpu.memory_space<vmem>>, vector<1x128xf32>
    tpu.vector_store %arg6[%c0_34, %c0_35], %86 {strides = array<i32>} : memref<2x128xf32, #tpu.memory_space<vmem>>, vector<1x128xf32>,
    %c1_36 = arith.constant 1 : index
    %88 = memref.load %arg5[%c1_36] : memref<2xf32, #tpu.memory_space<smem>>
    %c0_37 = arith.constant 0 : index
    %c1_38 = arith.constant 1 : index
    %89 = memref.load %arg4[%c0_37, %c1_38] : memref<3x2xf32, #tpu.memory_space<smem>>
    %90 = vector.broadcast %89 : f32 to vector<1x128xf32>
    %91 = arith.mulf %90, %24 : vector<1x128xf32>
    %92 = vector.broadcast %88 : f32 to vector<1x128xf32>
    %93 = arith.addf %92, %91 : vector<1x128xf32>
    %c1_39 = arith.constant 1 : index
    %c1_40 = arith.constant 1 : index
    %94 = memref.load %arg4[%c1_39, %c1_40] : memref<3x2xf32, #tpu.memory_space<smem>>
    %95 = vector.broadcast %94 : f32 to vector<1x128xf32>
    %96 = arith.mulf %95, %48 : vector<1x128xf32>
    %97 = arith.addf %93, %96 : vector<1x128xf32>
    %c2_41 = arith.constant 2 : index
    %c1_42 = arith.constant 1 : index
    %98 = memref.load %arg4[%c2_41, %c1_42] : memref<3x2xf32, #tpu.memory_space<smem>>
    %99 = vector.broadcast %98 : f32 to vector<1x128xf32>
    %100 = arith.mulf %99, %72 : vector<1x128xf32>
    %101 = arith.addf %97, %100 : vector<1x128xf32>
    %c1_43 = arith.constant 1 : index
    %c0_44 = arith.constant 0 : index
    %102 = vector.load %arg6[%c1_43, %c0_44] : memref<2x128xf32, #tpu.memory_space<vmem>>, vector<1x128xf32>
    tpu.vector_store %arg6[%c1_43, %c0_44], %101 {strides = array<i32>} : memref<2x128xf32, #tpu.memory_space<vmem>>, vector<1x128xf32>,
    return
  }
  func.func @transform_0(%arg0: i32) -> (i32, i32) {
    %c0_i32 = arith.constant 0 : i32
    %c0_i32_0 = arith.constant 0 : i32
    return %c0_i32, %arg0 : i32, i32
  }
  func.func @transform_1(%arg0: i32) -> (i32, i32) {
    %c0_i32 = arith.constant 0 : i32
    %c0_i32_0 = arith.constant 0 : i32
    %c0_i32_1 = arith.constant 0 : i32
    return %c0_i32, %c0_i32_0 : i32, i32
  }
  func.func @transform_2(%arg0: i32) -> i32 {
    %c0_i32 = arith.constant 0 : i32
    %c0_i32_0 = arith.constant 0 : i32
    return %c0_i32 : i32
  }
  func.func @transform_3(%arg0: i32) -> (i32, i32) {
    %c0_i32 = arith.constant 0 : i32
    %c0_i32_0 = arith.constant 0 : i32
    %c0_i32_1 = arith.constant 0 : i32
    return %c0_i32, %c0_i32_0 : i32, i32
  }
  func.func @transform_4(%arg0: i32) -> i32 {
    %c0_i32 = arith.constant 0 : i32
    %c0_i32_0 = arith.constant 0 : i32
    return %c0_i32 : i32
  }
  func.func @transform_5(%arg0: i32) -> (i32, i32) {
    %c0_i32 = arith.constant 0 : i32
    %c0_i32_0 = arith.constant 0 : i32
    return %c0_i32, %arg0 : i32, i32
  }
}

</mosaic_0001>

<bundles_post_ra>
// kernel: tpu_custom_call.1
= control target key start
LH: loop header
LB: loop body
LE: loop exit
PB: predicated region body
PF: predicated region fallthrough
CT: control target
= control target key end

     0   :  { %10 = vsyncpa [#allocation4], 0  ;;  %s413_s0 = inlined_call_operand.vmem [shape: f32[4,128], index: 0, kind: input, shape index: {}]   ;;  %s414_s1 = inlined_call_operand.vmem [shape: f32[4,3], index: 1, kind: input, shape index: {}]   ;;  %s415_s2 = inlined_call_operand.vmem [shape: f32[3], index: 2, kind: input, shape index: {}]   ;;  %s416_s3 = inlined_call_operand.vmem [shape: f32[3,2], index: 3, kind: input, shape index: {}]   ;;  %s417_s4 = inlined_call_operand.vmem [shape: f32[2], index: 4, kind: input, shape index: {}]   ;;  %s418_s5 = inlined_call_operand.hbm [shape: f32[2,128], index: 5, kind: output, shape index: {}]  }
   0x1   :  { %11 = vsyncpa [#allocation6], 0 }
   0x2   :  { %12 = vsyncpa [#allocation9], 0  ;;  %s32_s20 = sshll.u32 %s415_s2, 4  ;;  %s33_s20 = int_to_ptr.vmem [resolvable:$true] %s32_s20 }
   0x3   :  { %13 = vsyncpa [#allocation3], 0  ;;  %s22_s23 = sshll.u32 %s414_s1, 4  ;;  %s225_s24 = scalar_lea.vmem %s33_s20, 16  ;;  %s23_s23 = int_to_ptr.vmem [resolvable:$true] %s22_s23 }
   0x4   :  { %p226_p0 = scmp.ne.s32.totalorder %s33_s20, %s225_s24  ;;  %p230_p1 = scmp.lt.s32.totalorder %s33_s20, %s33_s20 }
   0x5   :  { %p231_p2 = scmp.lt.s32.totalorder %s225_s24, %s225_s24 }
   0x7   :  { %p232_p3 = por %p231_p2, %p230_p1 }
   0x9   :  { %p233_p4 = pnand %p232_p3, %p226_p0 }
   0xb   :  { %236 = shalt.err (!%p233_p4)
}
   0xc   :  { %s303_s25 = smov [#allocation5]   ;;  %s237_s26 = scalar_lea.vmem %s23_s23, 64 }
   0xd   :  { %35 = dma.vmem_to_smem %s33_s20, 16, %s303_s25, [#allocation6]  }
   0xe   :  { %p238_p5 = scmp.ne.s32.totalorder %s23_s23, %s237_s26  ;;  %p242_p6 = scmp.lt.s32.totalorder %s23_s23, %s23_s23 }
   0xf   :  { %p243_p7 = scmp.lt.s32.totalorder %s237_s26, %s237_s26 }
  0x11   :  { %p244_p8 = por %p243_p7, %p242_p6 }
  0x13   :  { %p245_p9 = pnand %p244_p8, %p238_p5 }
  0x15   :  { %248 = shalt.err (!%p245_p9)
}
  0x16   :  { %s304_s2 = smov [#allocation2]   ;;  %s42_s28 = sshll.u32 %s416_s3, 4  ;;  %s43_s28 = int_to_ptr.vmem [resolvable:$true] %s42_s28 }
  0x17   :  { %25 = dma.vmem_to_smem %s23_s23, 64, %s304_s2, [#allocation4]  }
  0x18   :  { %s52_s6 = sshll.u32 %s417_s4, 4  ;;  %s249_s7 = scalar_lea.vmem %s43_s28, 64  ;;  %s53_s6 = int_to_ptr.vmem [resolvable:$true] %s52_s6 }
  0x19   :  { %p250_p10 = scmp.ne.s32.totalorder %s43_s28, %s249_s7  ;;  %p254_p11 = scmp.lt.s32.totalorder %s43_s28, %s43_s28 }
  0x1a   :  { %p255_p12 = scmp.lt.s32.totalorder %s249_s7, %s249_s7 }
  0x1c   :  { %p256_p13 = por %p255_p12, %p254_p11 }
  0x1e   :  { %p257_p0 = pnand %p256_p13, %p250_p10 }
  0x20   :  { %260 = shalt.err (!%p257_p0)
}
  0x21   :  { %s305_s8 = smov [#allocation7]   ;;  %s261_s9 = scalar_lea.vmem %s53_s6, 16 }
  0x22   :  { %45 = dma.vmem_to_smem %s43_s28, 64, %s305_s8, [#allocation6]  }
  0x23   :  { %p262_p1 = scmp.ne.s32.totalorder %s53_s6, %s261_s9  ;;  %p266_p2 = scmp.lt.s32.totalorder %s53_s6, %s53_s6 }
  0x24   :  { %p267_p3 = scmp.lt.s32.totalorder %s261_s9, %s261_s9 }
  0x26   :  { %p268_p4 = por %p267_p3, %p266_p2 }
  0x28   :  { %p269_p5 = pnand %p268_p4, %p262_p1 }
  0x2a   :  { %272 = shalt.err (!%p269_p5)
}
  0x2b   :  { %s306_s3 = smov [#allocation8]  }
  0x2c   :  { %55 = dma.vmem_to_smem %s53_s6, 16, %s306_s3, [#allocation9]  }
  0x2d   :  { %295 = dma.done.wait [#allocation4], 64  }
  0x2e   :  { %296 = vsyncadd [#allocation4], 4294967232 }
  0x2f   :  { %297 = dma.done.wait [#allocation6], 80  }
  0x30   :  { %298 = vsyncadd [#allocation6], 4294967216 }
  0x31   :  { %299 = dma.done.wait [#allocation9], 16  }
  0x32   :  { %300 = vsyncadd [#allocation9], 4294967280 }
  0x33   :  { %68 = sfence }
  0x34   :  { %s70_s4 = sld [smem:[#allocation5]]  ;;  %s350_s14 = sld [smem:[#allocation5 + $0x1]]  ;;  %v69_v0 = vld [vmem:[%s413_s0] sm:$0xf] }
  0x35   :  { %s71_s10 = sld [smem:[#allocation2]]  ;;  %s205_s15 = sld [smem:[#allocation2 + $0x1]] }
  0x36   :  { %s201_s11 = sld [smem:[#allocation2 + $0x80]]  ;;  %s206_s16 = sld [smem:[#allocation2 + $0x81]] }
  0x37   :  { %s202_s12 = sld [smem:[#allocation2 + $0x100]]  ;;  %s355_s19 = sld [smem:[#allocation2 + $0x101]] }
  0x38   :  { %s203_s13 = sld [smem:[#allocation2 + $0x180]]  ;;  %s357_s20 = sld [smem:[#allocation2 + $0x181]] }
  0x39   :  { %s359_s21 = sld [smem:[#allocation5 + $0x2]]  ;;  %s370_s0 = sld [smem:[#allocation8]] }
  0x3a   :  { %s361_s22 = sld [smem:[#allocation2 + $0x2]]  ;;  %v74_v2 = vstv %s70_s4  ;;  %v102_v9 = vstv %s350_s14  ;;  %s372_s26 = sld [smem:[#allocation7]] }
  0x3b   :  { %v72_v1 = vstv %s71_s10  ;;  %s363_s23 = sld [smem:[#allocation2 + $0x82]]  ;;  %v100_v12 = vstv %s205_s15  ;;  %s374_s2 = sld [smem:[#allocation7 + $0x80]] }
  0x3c   :  { %v73_v3 = vmul.f32 %v72_v1, %v69_v0  ;;  %v77_v4 = vstv %s201_s11  ;;  %s365_s24 = sld [smem:[#allocation2 + $0x102]]  ;;  %v105_v13 = vstv %s206_s16  ;;  %v101_v16 = vmul.f32 %v100_v12, %v69_v0  ;;  %s379_s1 = sld [smem:[#allocation8 + $0x1]] }
  0x3d   :  { %v84_v5 = vstv %s202_s12  ;;  %s367_s25 = sld [smem:[#allocation2 + $0x182]]  ;;  %v78_v6 = vmul.f32 %v77_v4, %v69_v0  ;;  %v106_v17 = vmul.f32 %v105_v13, %v69_v0  ;;  %v112_v19 = vstv %s355_s19  ;;  %s381_s27 = sld [smem:[#allocation7 + $0x1]] }
  0x3e   :  { %v85_v7 = vmul.f32 %v84_v5, %v69_v0  ;;  %v91_v8 = vstv %s203_s13  ;;  %v75_v10 = vadd.f32 %v74_v2, %v73_v3  ;;  %v119_v20 = vstv %s357_s20  ;;  %s385_s28 = sld [smem:[#allocation7 + $0x81]]  ;;  %s389_s29 = sld [smem:[#allocation7 + $0x100]] }
  0x3f   :  { %v92_v11 = vmul.f32 %v91_v8, %v69_v0  ;;  %v80_v14 = vrot.slane %v78_v6, 1  ;;  %v103_v23 = vadd.f32 %v102_v9, %v101_v16  ;;  %v108_v24 = vrot.slane %v106_v17, 1  ;;  %s391_s30 = sld [smem:[#allocation7 + $0x101]]  ;;  %s307_s6 = smov [#allocation10]  }
  0x40   :  { %v87_v15 = vrot.slane %v85_v7, 2  ;;  %v128_v21 = vstv %s361_s22  ;;  %v113_v25 = vmul.f32 %v112_v19, %v69_v0  ;;  %v120_v26 = vmul.f32 %v119_v20, %v69_v0  ;;  %s190_s7 = sshll.u32 %s307_s6, 4  ;;  %s191_s7 = int_to_ptr.vmem [resolvable:$true] %s190_s7 }
  0x41   :  { %v94_v18 = vrot.slane %v92_v11, 3  ;;  %v82_v22 = vadd.f32 %v80_v14, %v75_v10  ;;  %v129_v27 = vmul.f32 %v128_v21, %v69_v0  ;;  %v130_v28 = vstv %s359_s21  ;;  %s273_s8 = scalar_lea.vmem %s191_s7, 32  ;;  %p278_p7 = scmp.lt.s32.totalorder %s191_s7, %s191_s7 }
  0x42   :  { %v133_v29 = vstv %s363_s23  ;;  %v110_v31 = vadd.f32 %v108_v24, %v103_v23  ;;  %v115_v32 = vrot.slane %v113_v25, 2  ;;  %v122_v34 = vrot.slane %v120_v26, 3  ;;  %p274_p6 = scmp.ne.s32.totalorder %s191_s7, %s273_s8  ;;  %p279_p8 = scmp.lt.s32.totalorder %s273_s8, %s273_s8 }
  0x43   :  { %v89_v30 = vadd.f32 %v87_v15, %v82_v22  ;;  %v134_v33 = vmul.f32 %v133_v29, %v69_v0  ;;  %v131_v35 = vadd.f32 %v130_v28, %v129_v27  ;;  %v140_v36 = vstv %s365_s24 }
  0x44   :  { %v147_v37 = vstv %s367_s25  ;;  %v117_v39 = vadd.f32 %v115_v32, %v110_v31  ;;  %v141_v41 = vmul.f32 %v140_v36, %v69_v0  ;;  %v156_v43 = vstv %s372_s26  ;;  %p280_p9 = por %p279_p8, %p278_p7 }
  0x45   :  { %v96_v38 = vadd.f32 %v94_v18, %v89_v30  ;;  %v136_v40 = vrot.slane %v134_v33, 1  ;;  %v148_v42 = vmul.f32 %v147_v37, %v69_v0  ;;  %v158_v44 = vstv %s370_s0 }
  0x46   :  { %v124_v46 = vadd.f32 %v122_v34, %v117_v39  ;;  %v143_v48 = vrot.slane %v141_v41, 2  ;;  %v161_v50 = vstv %s374_s2  ;;  %v171_v51 = vstv %s381_s27  ;;  %p281_p10 = pnand %p280_p9, %p274_p6 }
  0x47   :  { %v97_v45 = vmax.f32 %v96_v38, 0.0  ;;  %v138_v47 = vadd.f32 %v136_v40, %v131_v35  ;;  %v150_v49 = vrot.slane %v148_v42, 3  ;;  %v173_v52 = vstv %s379_s1 }
  0x48   :  { %v125_v53 = vmax.f32 %v124_v46, 0.0  ;;  %v176_v57 = vstv %s385_s28  ;;  %v165_v62 = vstv %s389_s29  ;;  %v180_v0 = vstv %s391_s30 }
  0x49   :  { %v145_v54 = vadd.f32 %v143_v48, %v138_v47  ;;  %v157_v55 = vmul.f32 %v156_v43, %v97_v45  ;;  %v172_v56 = vmul.f32 %v171_v51, %v97_v45 }
  0x4a   :  { %v162_v60 = vmul.f32 %v161_v50, %v125_v53  ;;  %v177_v63 = vmul.f32 %v176_v57, %v125_v53 }
  0x4b   :  { %v152_v58 = vadd.f32 %v150_v49, %v145_v54  ;;  %v159_v59 = vadd.f32 %v158_v44, %v157_v55  ;;  %v174_v61 = vadd.f32 %v173_v52, %v172_v56 }
  0x4d   :  { %v153_v1 = vmax.f32 %v152_v58, 0.0  ;;  %v163_v2 = vadd.f32 %v162_v60, %v159_v59  ;;  %v178_v3 = vadd.f32 %v177_v63, %v174_v61 }
  0x4f   :  { %v166_v4 = vmul.f32 %v165_v62, %v153_v1  ;;  %v181_v5 = vmul.f32 %v180_v0, %v153_v1 }
  0x51   :  { %v167_v6 = vadd.f32 %v166_v4, %v163_v2  ;;  %v182_v7 = vadd.f32 %v181_v5, %v178_v3 }
  0x53   :  { %168 = vst [vmem:[#allocation10] sm:$0x1] %v167_v6  ;;  %183 = vst [vmem:[#allocation10 + $0x1] sm:$0x1] %v182_v7 }
  0x54   :  { %284 = shalt.err (!%p281_p10)
}
  0x55   :  { %s285_s4 = scalar_lea.hbm %s418_s5, 32 }
  0x56   :  { %p286_p11 = scmp.ne.s32.totalorder %s418_s5, %s285_s4  ;;  %p289_p12 = scmp.lt.u32.totalorder %s285_s4, %s418_s5 }
  0x58   :  { %p291_p13 = pnand %p289_p12, %p286_p11 }
  0x5a   :  { %294 = shalt.err (!%p291_p13)
}
  0x5b   :  { %193 = dma.vmem_to_hbm [thread:$0]  %s191_s7, 32, %s418_s5, [#allocation3]  }
  0x5c   :  { %301 = dma.done.wait [#allocation3], 32  }
  0x5d   :  { %302 = vsyncadd [#allocation3], 4294967264 }
  0x5e   :  { %197 = vsyncpa [#allocation3], 1 }
  0x5f   :  { %198 = vsyncpa [#allocation4], 1 }
  0x60   :  { %199 = vsyncpa [#allocation6], 1 }
  0x61   :  { %200 = vsyncpa [#allocation9], 1 }

</bundles_post_ra>
